<compile_context>
chip_gen: v6e
topology: v6e:2x2x1
jax: 0.10.0
libtpu: 0.0.40
codegen_flags: <defaults>
</compile_context>

<pallas_src>
import jax
import jax.numpy as jnp
from jax.experimental import pallas as pl
from jax.experimental.pallas import tpu as pltpu

LRELU_SLOPE = 0.2


def _round_up(x, m):
    return ((x + m - 1) // m) * m


def _vmem_limit_bytes():
    """Generation-aware scoped-VMEM limit (v5e/v6e: 128 MiB part, v7x: 64 MiB)."""
    cap = 64 * 1024 * 1024  # v7x-safe fallback
    try:
        info = pltpu.get_tpu_info()
        cap = int(getattr(info, "vmem_capacity_bytes", cap)) or cap
    except Exception:
        pass
    return max(32 * 1024 * 1024, min((cap * 3) // 4, 100 * 1024 * 1024))


# ---------------------------------------------------------------------------
# Kernel: one K=9*Cin MXU dot per tile + f32 bias/LeakyReLU epilogue.
# ---------------------------------------------------------------------------
def _conv3x3_kernel(x_ref, w_ref, b_ref, o_ref):
    """x_ref: (1, K, n_tile) bf16 im2col columns (spatial in lanes).
    w_ref: (Cp, K) bf16 tap-folded weights (Cout padded to 16 sublanes).
    b_ref: (Cp, 1) f32.
    o_ref: (1, Cp, n_tile) bf16 output tile (channel padding sliced host-side).
    """
    acc = jnp.dot(w_ref[...], x_ref[0], preferred_element_type=jnp.float32)
    acc = acc + b_ref[...]                                # f32 epilogue (VPU)
    acc = jnp.where(acc >= 0.0, acc, LRELU_SLOPE * acc)   # LeakyReLU(0.2)
    o_ref[0] = acc.astype(o_ref.dtype)


def _pick_n_tile(n_total, k, cp, batch, budget):
    """Largest lane-aligned spatial tile whose padded working set fits `budget`,
    keeping >= 2 grid blocks overall (v7x has 2 TensorCores)."""
    k_pad = _round_up(k, 16)          # bf16 sublane packing of the K axis
    cp_pad = _round_up(cp, 16)
    fixed = 2 * cp_pad * _round_up(k, 128) * 2     # weights, double-buffered
    fixed += 2 * _round_up(cp, 8) * 128 * 4        # bias, double-buffered

    def fits(t):
        tp = _round_up(t, 128)
        per = 2 * k_pad * tp * 2       # input block, 2 buffers, bf16
        per += 2 * cp_pad * tp * 2     # output block, 2 buffers, bf16
        per += _round_up(cp, 8) * tp * 4  # f32 result / epilogue temporaries
        return fixed + per <= budget

    if n_total <= 128:
        return n_total
    if batch >= 2 and fits(n_total):
        return n_total                 # full flattened-spatial row per block
    tile = 128
    for t in range(_round_up(n_total, 128), 127, -128):
        if fits(t) and batch * pl.cdiv(n_total, t) >= 2:
            tile = t
            break
    return tile


def conv2d_block(x_nchw, w_mat, b_col, stride, cout):
    """3x3 conv (pad=1, given stride) + bias + LeakyReLU(0.2); NCHW in/out (bf16 out)."""
    B, cin, H, W = x_nchw.shape
    s = stride
    ho = (H - 1) // s + 1
    wo = (W - 1) // s + 1
    cp, K = w_mat.shape                 # K = 9 * cin, cp = round_up(cout, 16)
    n_total = ho * wo

    # ---- XLA glue: tap-folded im2col, K in sublanes, flattened spatial in lanes.
    xp = jnp.pad(x_nchw, ((0, 0), (0, 0), (1, 1), (1, 1))).astype(jnp.bfloat16)
    cols = []
    for dh in range(3):
        for dw in range(3):
            cols.append(xp[:, :, dh::s, dw::s][:, :, :ho, :wo])
    x_cols = jnp.concatenate(cols, axis=1).reshape(B, K, n_total)

    vmem_limit = _vmem_limit_bytes()
    n_tile = _pick_n_tile(n_total, K, cp, B, (vmem_limit * 3) // 4)
    n_tiles = pl.cdiv(n_total, n_tile)

    out = pl.pallas_call(
        _conv3x3_kernel,
        out_shape=jax.ShapeDtypeStruct((B, cp, n_total), jnp.bfloat16),
        grid_spec=pltpu.PrefetchScalarGridSpec(
            num_scalar_prefetch=0,
            grid=(B, n_tiles),
            in_specs=[
                pl.BlockSpec((1, K, n_tile), lambda b, j: (b, 0, j)),
                pl.BlockSpec((cp, K), lambda b, j: (0, 0)),
                pl.BlockSpec((cp, 1), lambda b, j: (0, 0)),
            ],
            out_specs=pl.BlockSpec((1, cp, n_tile), lambda b, j: (b, 0, j)),
        ),
        compiler_params=pltpu.CompilerParams(
            dimension_semantics=("parallel", "parallel"),
            vmem_limit_bytes=vmem_limit,
        ),
        cost_estimate=pl.CostEstimate(
            flops=2 * B * n_total * K * cp,
            transcendentals=0,
            bytes_accessed=int(x_cols.size * 2 + w_mat.size * 2
                               + b_col.size * 4 + B * cp * n_total * 2),
        ),
    )(x_cols, w_mat, b_col)

    # Drop the sublane channel padding (fuses with the next layer's im2col glue).
    return out.reshape(B, cp, ho, wo)[:, :cout]


def init_style_cnn_encoder(key, input_dim, dim, style_dim, layers):
    """PyTorch-style Conv2d init plus kernel-ready tap-folded weight relayout
    (hoisted here so the forward pass does no per-call weight transposes)."""

    def conv_layer(k, cin, cout, stride):
        k1, k2 = jax.random.split(k)
        fan_in = cin * 9
        bound = 1.0 / float(fan_in) ** 0.5
        w = jax.random.uniform(k1, (cout, cin, 3, 3), jnp.float32, -bound, bound)
        b = jax.random.uniform(k2, (cout,), jnp.float32, -bound, bound)
        cp = _round_up(cout, 16)   # bf16 sublane packing; sliced off host-side
        # (Cout, Cin, kh, kw) -> (Cout, kh, kw, Cin) -> (Cout, 9*Cin), pad rows.
        w_mat = jnp.transpose(w, (0, 2, 3, 1)).reshape(cout, 9 * cin)
        w_mat = jnp.pad(w_mat, ((0, cp - cout), (0, 0))).astype(jnp.bfloat16)
        b_col = jnp.pad(b, (0, cp - cout)).reshape(cp, 1).astype(jnp.float32)
        return {"w_raw": w, "b_raw": b, "w": w_mat, "b": b_col,
                "stride": stride, "cout": cout}

    keys = jax.random.split(key, layers + 1)
    params = [conv_layer(keys[0], input_dim, dim, 1)]          # head_0
    for i in range(layers):                                    # down_layers
        r = min(2 ** i, 8)
        indim = dim * r
        outdim = min(indim * 2, style_dim)
        params.append(conv_layer(keys[i + 1], indim, outdim, 2))
    return params


def style_cnn_encoder_forward(params, x_nchw):
    """Feature list in reversed order (deepest first), NCHW — module semantics."""
    # TODO(synk): at this module's true scale (16x16 -> 4x4, <1 MiB activations)
    # fusing all layers into one pallas_call with activations held in VMEM
    # scratch would remove the inter-layer HBM round trips entirely; kept
    # per-layer kernels because the stride-2 in-kernel relayout does not lower
    # robustly today.
    x = x_nchw
    feats = []
    for p in params:
        x = conv2d_block(x, p["w"], p["b"], p["stride"], p["cout"])
        feats.append(x)
    # Returned features match the module's layout/dtype (NCHW f32); the
    # perf-critical inter-layer path above stays bf16.
    return [f.astype(jnp.float32) for f in reversed(feats)]


def _reference_forward(params, x_nchw):
    """Pure-JAX f32 reference of the module's forward."""
    x = x_nchw
    feats = []
    for p in params:
        s = p["stride"]
        y = jax.lax.conv_general_dilated(
            x, p["w_raw"], window_strides=(s, s), padding=((1, 1), (1, 1)),
            dimension_numbers=("NCHW", "OIHW", "NCHW"),
            precision=jax.lax.Precision.HIGHEST)
        y = y + p["b_raw"][None, :, None, None]
        y = jnp.where(y >= 0.0, y, LRELU_SLOPE * y)
        feats.append(y)
        x = y
    return list(reversed(feats))


if __name__ == "__main__":
    key = jax.random.PRNGKey(0)
    k_param, k_x = jax.random.split(key)

    # Small config consistent with the module:
    #   StyleCNNEncoder(input_dim=4, dim=8, style_dim=32, layers=2,
    #                   norm='none', activ='lrelu', pad_type='zero')
    B, input_dim, H, W = 2, 4, 16, 16
    dim, style_dim, layers = 8, 32, 2

    params = init_style_cnn_encoder(k_param, input_dim, dim, style_dim, layers)
    x = jax.random.normal(k_x, (B, input_dim, H, W), jnp.float32)

    fwd = jax.jit(lambda inp: style_cnn_encoder_forward(params, inp))
    feats = fwd(x)
    for f in feats:
        jax.block_until_ready(f)

    # Expected shapes (deepest first): (2,32,4,4), (2,16,8,8), (2,8,16,16)
    assert feats[0].shape == (B, 32, 4, 4)
    assert feats[1].shape == (B, 16, 8, 8)
    assert feats[2].shape == (B, 8, 16, 16)

    # Numerical check vs a pure-JAX f32 reference.  Tolerance covers the
    # deliberate bf16 matmul operands + bf16 activation stores.
    ref = _reference_forward(params, x)
    for got, want in zip(feats, ref):
        err = float(jnp.max(jnp.abs(got - want)))
        assert err < 1e-1, f"max abs err {err}"

    print("KERNEL_OK")
</pallas_src>

<mosaic_0001>
module attributes {stable_mosaic.version = 11 : i64} {
  func.func @_conv3x3_kernel(%arg0: i32, %arg1: i32, %arg2: memref<1x36x256xbf16, #tpu.memory_space<vmem>>, %arg3: memref<16x36xbf16, #tpu.memory_space<vmem>>, %arg4: memref<16x1xf32, #tpu.memory_space<vmem>>, %arg5: memref<1x16x256xbf16, #tpu.memory_space<vmem>>) attributes {dimension_semantics = [#tpu.dimension_semantics<parallel>, #tpu.dimension_semantics<parallel>], iteration_bounds = array<i64: 2, 1>, scalar_prefetch = 0 : i64, scratch_operands = 0 : i64, tpu.core_type = #tpu.core_type<tc>, window_params = [{transform_indices = @transform_0, window_bounds = array<i64: 1, 36, 256>}, {pipeline_mode = #tpu.pipeline_mode<synchronous>, transform_indices = @transform_1, window_bounds = array<i64: 16, 36>}, {pipeline_mode = #tpu.pipeline_mode<synchronous>, transform_indices = @transform_2, window_bounds = array<i64: 16, 1>}, {transform_indices = @transform_3, window_bounds = array<i64: 1, 16, 256>}]} {
    %c0 = arith.constant 0 : index
    %c0_0 = arith.constant 0 : index
    %0 = vector.load %arg3[%c0, %c0_0] : memref<16x36xbf16, #tpu.memory_space<vmem>>, vector<16x36xbf16>
    %c0_1 = arith.constant 0 : index
    %c0_2 = arith.constant 0 : index
    %c0_3 = arith.constant 0 : index
    %1 = vector.load %arg2[%c0_1, %c0_2, %c0_3] : memref<1x36x256xbf16, #tpu.memory_space<vmem>>, vector<1x36x256xbf16>
    %2 = vector.shape_cast %1 : vector<1x36x256xbf16> to vector<36x256xbf16>
    %cst = arith.constant dense<0.000000e+00> : vector<16x256xf32>
    %3 = tpu.matmul %0, %2, %cst {dimension_numbers = #tpu.dot_dimension_numbers<[1], [0], [0], [1], [0, 0, 1, 1], [], []>} : vector<16x36xbf16>, vector<36x256xbf16>, vector<16x256xf32> -> vector<16x256xf32>
    %c0_4 = arith.constant 0 : index
    %c0_5 = arith.constant 0 : index
    %4 = vector.load %arg4[%c0_4, %c0_5] : memref<16x1xf32, #tpu.memory_space<vmem>>, vector<16x1xf32>
    %5 = vector.broadcast %4 : vector<16x1xf32> to vector<16x256xf32>
    %6 = arith.addf %3, %5 : vector<16x256xf32>
    %cst_6 = arith.constant 0.000000e+00 : f32
    %7 = vector.broadcast %cst_6 : f32 to vector<16x256xf32>
    %8 = arith.cmpf oge, %6, %7 : vector<16x256xf32>
    %cst_7 = arith.constant 2.000000e-01 : f32
    %9 = vector.broadcast %cst_7 : f32 to vector<16x256xf32>
    %10 = arith.mulf %9, %6 : vector<16x256xf32>
    %11 = arith.select %8, %6, %10 : vector<16x256xi1>, vector<16x256xf32>
    %12 = arith.truncf %11 : vector<16x256xf32> to vector<16x256xbf16>
    %c0_8 = arith.constant 0 : index
    %c0_9 = arith.constant 0 : index
    %c0_10 = arith.constant 0 : index
    %13 = vector.load %arg5[%c0_8, %c0_9, %c0_10] : memref<1x16x256xbf16, #tpu.memory_space<vmem>>, vector<1x16x256xbf16>
    %14 = vector.shape_cast %13 : vector<1x16x256xbf16> to vector<16x256xbf16>
    %15 = vector.shape_cast %12 : vector<16x256xbf16> to vector<1x16x256xbf16>
    tpu.vector_store %arg5[%c0_8, %c0_9, %c0_10], %15 {strides = array<i32>} : memref<1x16x256xbf16, #tpu.memory_space<vmem>>, vector<1x16x256xbf16>,
    return
  }
  func.func @transform_0(%arg0: i32, %arg1: i32) -> (i32, i32, i32) {
    %c0_i32 = arith.constant 0 : i32
    %c0_i32_0 = arith.constant 0 : i32
    return %arg0, %c0_i32, %arg1 : i32, i32, i32
  }
  func.func @transform_1(%arg0: i32, %arg1: i32) -> (i32, i32) {
    %c0_i32 = arith.constant 0 : i32
    %c0_i32_0 = arith.constant 0 : i32
    %c0_i32_1 = arith.constant 0 : i32
    return %c0_i32, %c0_i32_0 : i32, i32
  }
  func.func @transform_2(%arg0: i32, %arg1: i32) -> (i32, i32) {
    %c0_i32 = arith.constant 0 : i32
    %c0_i32_0 = arith.constant 0 : i32
    %c0_i32_1 = arith.constant 0 : i32
    return %c0_i32, %c0_i32_0 : i32, i32
  }
  func.func @transform_3(%arg0: i32, %arg1: i32) -> (i32, i32, i32) {
    %c0_i32 = arith.constant 0 : i32
    %c0_i32_0 = arith.constant 0 : i32
    return %arg0, %c0_i32, %arg1 : i32, i32, i32
  }
}

module attributes {stable_mosaic.version = 11 : i64} {
  func.func @_conv3x3_kernel(%arg0: i32, %arg1: i32, %arg2: memref<1x72x64xbf16, #tpu.memory_space<vmem>>, %arg3: memref<16x72xbf16, #tpu.memory_space<vmem>>, %arg4: memref<16x1xf32, #tpu.memory_space<vmem>>, %arg5: memref<1x16x64xbf16, #tpu.memory_space<vmem>>) attributes {dimension_semantics = [#tpu.dimension_semantics<parallel>, #tpu.dimension_semantics<parallel>], iteration_bounds = array<i64: 2, 1>, scalar_prefetch = 0 : i64, scratch_operands = 0 : i64, tpu.core_type = #tpu.core_type<tc>, window_params = [{transform_indices = @transform_0, window_bounds = array<i64: 1, 72, 64>}, {pipeline_mode = #tpu.pipeline_mode<synchronous>, transform_indices = @transform_1, window_bounds = array<i64: 16, 72>}, {pipeline_mode = #tpu.pipeline_mode<synchronous>, transform_indices = @transform_2, window_bounds = array<i64: 16, 1>}, {transform_indices = @transform_3, window_bounds = array<i64: 1, 16, 64>}]} {
    %c0 = arith.constant 0 : index
    %c0_0 = arith.constant 0 : index
    %0 = vector.load %arg3[%c0, %c0_0] : memref<16x72xbf16, #tpu.memory_space<vmem>>, vector<16x72xbf16>
    %c0_1 = arith.constant 0 : index
    %c0_2 = arith.constant 0 : index
    %c0_3 = arith.constant 0 : index
    %1 = vector.load %arg2[%c0_1, %c0_2, %c0_3] : memref<1x72x64xbf16, #tpu.memory_space<vmem>>, vector<1x72x64xbf16>
    %2 = vector.shape_cast %1 : vector<1x72x64xbf16> to vector<72x64xbf16>
    %cst = arith.constant dense<0.000000e+00> : vector<16x64xf32>
    %3 = tpu.matmul %0, %2, %cst {dimension_numbers = #tpu.dot_dimension_numbers<[1], [0], [0], [1], [0, 0, 1, 1], [], []>} : vector<16x72xbf16>, vector<72x64xbf16>, vector<16x64xf32> -> vector<16x64xf32>
    %c0_4 = arith.constant 0 : index
    %c0_5 = arith.constant 0 : index
    %4 = vector.load %arg4[%c0_4, %c0_5] : memref<16x1xf32, #tpu.memory_space<vmem>>, vector<16x1xf32>
    %5 = vector.broadcast %4 : vector<16x1xf32> to vector<16x64xf32>
    %6 = arith.addf %3, %5 : vector<16x64xf32>
    %cst_6 = arith.constant 0.000000e+00 : f32
    %7 = vector.broadcast %cst_6 : f32 to vector<16x64xf32>
    %8 = arith.cmpf oge, %6, %7 : vector<16x64xf32>
    %cst_7 = arith.constant 2.000000e-01 : f32
    %9 = vector.broadcast %cst_7 : f32 to vector<16x64xf32>
    %10 = arith.mulf %9, %6 : vector<16x64xf32>
    %11 = arith.select %8, %6, %10 : vector<16x64xi1>, vector<16x64xf32>
    %12 = arith.truncf %11 : vector<16x64xf32> to vector<16x64xbf16>
    %c0_8 = arith.constant 0 : index
    %c0_9 = arith.constant 0 : index
    %c0_10 = arith.constant 0 : index
    %13 = vector.load %arg5[%c0_8, %c0_9, %c0_10] : memref<1x16x64xbf16, #tpu.memory_space<vmem>>, vector<1x16x64xbf16>
    %14 = vector.shape_cast %13 : vector<1x16x64xbf16> to vector<16x64xbf16>
    %15 = vector.shape_cast %12 : vector<16x64xbf16> to vector<1x16x64xbf16>
    tpu.vector_store %arg5[%c0_8, %c0_9, %c0_10], %15 {strides = array<i32>} : memref<1x16x64xbf16, #tpu.memory_space<vmem>>, vector<1x16x64xbf16>,
    return
  }
  func.func @transform_0(%arg0: i32, %arg1: i32) -> (i32, i32, i32) {
    %c0_i32 = arith.constant 0 : i32
    %c0_i32_0 = arith.constant 0 : i32
    return %arg0, %c0_i32, %arg1 : i32, i32, i32
  }
  func.func @transform_1(%arg0: i32, %arg1: i32) -> (i32, i32) {
    %c0_i32 = arith.constant 0 : i32
    %c0_i32_0 = arith.constant 0 : i32
    %c0_i32_1 = arith.constant 0 : i32
    return %c0_i32, %c0_i32_0 : i32, i32
  }
  func.func @transform_2(%arg0: i32, %arg1: i32) -> (i32, i32) {
    %c0_i32 = arith.constant 0 : i32
    %c0_i32_0 = arith.constant 0 : i32
    %c0_i32_1 = arith.constant 0 : i32
    return %c0_i32, %c0_i32_0 : i32, i32
  }
  func.func @transform_3(%arg0: i32, %arg1: i32) -> (i32, i32, i32) {
    %c0_i32 = arith.constant 0 : i32
    %c0_i32_0 = arith.constant 0 : i32
    return %arg0, %c0_i32, %arg1 : i32, i32, i32
  }
}

module attributes {stable_mosaic.version = 11 : i64} {
  func.func @_conv3x3_kernel(%arg0: i32, %arg1: i32, %arg2: memref<1x144x16xbf16, #tpu.memory_space<vmem>>, %arg3: memref<32x144xbf16, #tpu.memory_space<vmem>>, %arg4: memref<32x1xf32, #tpu.memory_space<vmem>>, %arg5: memref<1x32x16xbf16, #tpu.memory_space<vmem>>) attributes {dimension_semantics = [#tpu.dimension_semantics<parallel>, #tpu.dimension_semantics<parallel>], iteration_bounds = array<i64: 2, 1>, scalar_prefetch = 0 : i64, scratch_operands = 0 : i64, tpu.core_type = #tpu.core_type<tc>, window_params = [{transform_indices = @transform_0, window_bounds = array<i64: 1, 144, 16>}, {pipeline_mode = #tpu.pipeline_mode<synchronous>, transform_indices = @transform_1, window_bounds = array<i64: 32, 144>}, {pipeline_mode = #tpu.pipeline_mode<synchronous>, transform_indices = @transform_2, window_bounds = array<i64: 32, 1>}, {transform_indices = @transform_3, window_bounds = array<i64: 1, 32, 16>}]} {
    %c0 = arith.constant 0 : index
    %c0_0 = arith.constant 0 : index
    %0 = vector.load %arg3[%c0, %c0_0] : memref<32x144xbf16, #tpu.memory_space<vmem>>, vector<32x144xbf16>
    %c0_1 = arith.constant 0 : index
    %c0_2 = arith.constant 0 : index
    %c0_3 = arith.constant 0 : index
    %1 = vector.load %arg2[%c0_1, %c0_2, %c0_3] : memref<1x144x16xbf16, #tpu.memory_space<vmem>>, vector<1x144x16xbf16>
    %2 = vector.shape_cast %1 : vector<1x144x16xbf16> to vector<144x16xbf16>
    %cst = arith.constant dense<0.000000e+00> : vector<32x16xf32>
    %3 = tpu.matmul %0, %2, %cst {dimension_numbers = #tpu.dot_dimension_numbers<[1], [0], [0], [1], [0, 0, 1, 1], [], []>} : vector<32x144xbf16>, vector<144x16xbf16>, vector<32x16xf32> -> vector<32x16xf32>
    %c0_4 = arith.constant 0 : index
    %c0_5 = arith.constant 0 : index
    %4 = vector.load %arg4[%c0_4, %c0_5] : memref<32x1xf32, #tpu.memory_space<vmem>>, vector<32x1xf32>
    %5 = vector.broadcast %4 : vector<32x1xf32> to vector<32x16xf32>
    %6 = arith.addf %3, %5 : vector<32x16xf32>
    %cst_6 = arith.constant 0.000000e+00 : f32
    %7 = vector.broadcast %cst_6 : f32 to vector<32x16xf32>
    %8 = arith.cmpf oge, %6, %7 : vector<32x16xf32>
    %cst_7 = arith.constant 2.000000e-01 : f32
    %9 = vector.broadcast %cst_7 : f32 to vector<32x16xf32>
    %10 = arith.mulf %9, %6 : vector<32x16xf32>
    %11 = arith.select %8, %6, %10 : vector<32x16xi1>, vector<32x16xf32>
    %12 = arith.truncf %11 : vector<32x16xf32> to vector<32x16xbf16>
    %c0_8 = arith.constant 0 : index
    %c0_9 = arith.constant 0 : index
    %c0_10 = arith.constant 0 : index
    %13 = vector.load %arg5[%c0_8, %c0_9, %c0_10] : memref<1x32x16xbf16, #tpu.memory_space<vmem>>, vector<1x32x16xbf16>
    %14 = vector.shape_cast %13 : vector<1x32x16xbf16> to vector<32x16xbf16>
    %15 = vector.shape_cast %12 : vector<32x16xbf16> to vector<1x32x16xbf16>
    tpu.vector_store %arg5[%c0_8, %c0_9, %c0_10], %15 {strides = array<i32>} : memref<1x32x16xbf16, #tpu.memory_space<vmem>>, vector<1x32x16xbf16>,
    return
  }
  func.func @transform_0(%arg0: i32, %arg1: i32) -> (i32, i32, i32) {
    %c0_i32 = arith.constant 0 : i32
    %c0_i32_0 = arith.constant 0 : i32
    return %arg0, %c0_i32, %arg1 : i32, i32, i32
  }
  func.func @transform_1(%arg0: i32, %arg1: i32) -> (i32, i32) {
    %c0_i32 = arith.constant 0 : i32
    %c0_i32_0 = arith.constant 0 : i32
    %c0_i32_1 = arith.constant 0 : i32
    return %c0_i32, %c0_i32_0 : i32, i32
  }
  func.func @transform_2(%arg0: i32, %arg1: i32) -> (i32, i32) {
    %c0_i32 = arith.constant 0 : i32
    %c0_i32_0 = arith.constant 0 : i32
    %c0_i32_1 = arith.constant 0 : i32
    return %c0_i32, %c0_i32_0 : i32, i32
  }
  func.func @transform_3(%arg0: i32, %arg1: i32) -> (i32, i32, i32) {
    %c0_i32 = arith.constant 0 : i32
    %c0_i32_0 = arith.constant 0 : i32
    return %arg0, %c0_i32, %arg1 : i32, i32, i32
  }
}

</mosaic_0001>

<bundles_post_ra>
// kernel: _lambda_.3
= control target key start
LH: loop header
LB: loop body
LE: loop exit
PB: predicated region body
PF: predicated region fallthrough
CT: control target
= control target key end

     0   :  { %s532_s12 = smov 0   ;;  %s534_s13 = smov 0   ;;  %s578_s0 = inlined_call_operand.vmem [shape: bf16[2,36,256], index: 0, kind: input, shape index: {}]   ;;  %s579_s1 = inlined_call_operand.vmem [shape: bf16[16,36], index: 1, kind: input, shape index: {}]   ;;  %s580_s2 = inlined_call_operand.vmem [shape: f32[16,1], index: 2, kind: input, shape index: {}]   ;;  %s581_s3 = inlined_call_operand.vmem [shape: bf16[2,16,256], index: 3, kind: output, shape index: {}]  }
   0x1   :  { %s536_s14 = smov 0  }
   0x2 LB: > { %s25_s15 = sadd.s32 1, %s505_s13  ;;  %p431_p0 = scmp.ge.s32.totalorder %s509_s14, 1  ;;  %s509_s14 = sphi %s536_s14, %s13_s14   ;;  %s505_s13 = sphi %s534_s13, %s583_s13   ;;  %s501_s12 = sphi %s532_s12, %s582_s12  }
   0x3   : > { %p27_p1 = scmp.ge.s32.totalorder %s25_s15, 2  ;;  %p158_p2 = scmp.lt.s32.totalorder %s509_s14, 3 }
   0x5   : > { %s585_s15 = smov (%p27_p1, %s25_s15), 0  ;;  %p159_p3 = pnand %p431_p0, %p158_p2 }
   0x6   : > { %p191_p4 = scmp.lt.s32.totalorder (!%p159_p3), %s501_s12, 1 }
   0x7   : > { %162 = sbr.rel (%p159_p3) target bundleno = 238 (0xee), region = 32 }
   0xc   : > { %v511_v0 = vmov 0   ;;  %v218_v1 = vld [vmem:[%s580_s2] sm:$0xff]  ;;  %s587_s12 = smov (!%p191_p4, %s501_s12), 1  ;;  %v219_v2 = vld [vmem:[%s580_s2 + $0x8] sm:$0xff]  ;;  %vm264_vm0 = vcmask 1041408   ;;  %vm260_vm1 = vcmask 293888  }
   0xd   : > { %303 = vmatprep.mubr.bf16.mxu0 %v511_v0  ;;  %477 = vset.pattern.permute.xlu0 %v511_v0  ;;  %s451_s20 = smul.u32 40, %s587_s12  ;;  %v486_v11 = vld [vmem:[%s579_s1] sm:$0xff]   ;;  %s448_s26 = sshll.u32 %s587_s12, 4 }
   0xe   : > { %222 = vperm.xlu0 %477, %v218_v1   ;;  %s208_s29 = scalar_lea.vmem %s581_s3, %s448_s26 }
   0xf   : > { %s198_s23 = scalar_lea.vmem %s578_s0, %s451_s20 }
  0x10   : > { %v217_v3 = vld [vmem:[%s198_s23 + $0x20] sm:$0x33]  ;;  %v480_v6 = vld [vmem:[%s198_s23 + $0x14] ss:$8 sps:$4 sm:$0xff]   ;;  %v482_v8 = vld [vmem:[%s198_s23 + $0x10] ss:$8 sps:$4 sm:$0xff]  }
  0x11   : > { %v441_v4 = vcombine.high %v217_v3, %v217_v3  ;;  %v440_v5 = vcombine.low %v217_v3, %v217_v3  ;;  %v483_v9 = vld [vmem:[%s198_s23 + $0x4] ss:$8 sps:$4 sm:$0xff]   ;;  %v485_v10 = vld [vmem:[%s198_s23] ss:$8 sps:$4 sm:$0xff]  }
  0x12   : > { %227 = vperm.xlu0 %477, %v219_v2  }
  0x13   : > { %442 = vmatprep.subr.msk.bf16.mxu0 %vm264_vm0, %v441_v4  ;;  %v266_v7 = vsel %vm264_vm0, %v440_v5, 0 }
  0x14   : > { %282 = vmatpush1.bf16.msra.mxu0 %v266_v7 }
  0x15   : > { %283 = vmatprep.subr.bf16.mxu0 %v480_v6 }
  0x18   : > { %284 = vmatpush1.bf16.msra.mxu0 %v482_v8 }
  0x19   : > { %285 = vmatprep.subr.bf16.mxu0 %v483_v9 }
  0x1c   : > { %286 = vmatpush1.bf16.msra.mxu0 %v485_v10 }
  0x1f   : > { %443 = vmatmul.mubr.msk.bf16.vlgmr.msra.gmra.mxu0 %vm260_vm1, %v486_v11 }
  0x89   : > { %v223_v12 = vpop.permute.xlu0 %222 }
  0x8d   : > { %v228_v18 = vpop.permute.xlu0 %227 }
  0xdf   : > { %v305_v13 = vpop.f32.mrf.mxu0 }
  0xe0   : > { %v306_v14 = vadd.f32 %v305_v13, %v223_v12 }
  0xe1   : > { %v307_v15 = vpop.f32.mrf.mxu0 }
  0xe2   : > { %v318_v16 = vmul.f32 0.2, %v306_v14  ;;  %v308_v17 = vadd.f32 %v307_v15, %v223_v12  ;;  %vm314_vm2 = vcmp.ge.f32.partialorder %v306_v14, 0.0 }
  0xe3   : > { %v309_v19 = vpop.f32.mrf.mxu0 }
  0xe4   : > { %vm315_vm3 = vcmp.ge.f32.partialorder %v308_v17, 0.0  ;;  %v319_v20 = vmul.f32 0.2, %v308_v17  ;;  %v310_v21 = vadd.f32 %v309_v19, %v228_v18  ;;  %v322_v23 = vsel %vm314_vm2, %v306_v14, %v318_v16 }
  0xe5   : > { %v311_v22 = vpop.f32.mrf.mxu0 }
  0xe6   : > { %v323_v24 = vsel %vm315_vm3, %v308_v17, %v319_v20  ;;  %v320_v25 = vmul.f32 0.2, %v310_v21  ;;  %v312_v26 = vadd.f32 %v311_v22, %v228_v18  ;;  %vm316_vm4 = vcmp.ge.f32.partialorder %v310_v21, 0.0 }
  0xe7   : > { %v449_v27 = vpack.c.bf16 %v323_v24, %v322_v23 }
  0xe8   : > { %vm317_vm5 = vcmp.ge.f32.partialorder %v312_v26, 0.0  ;;  %v321_v28 = vmul.f32 0.2, %v312_v26  ;;  %v324_v29 = vsel %vm316_vm4, %v310_v21, %v320_v25 }
  0xe9   : > { %338 = vst [vmem:[%s208_s29] sm:$0xff] %v449_v27 }
  0xea   : > { %v325_v30 = vsel %vm317_vm5, %v312_v26, %v321_v28 }
  0xeb   : > { %v450_v31 = vpack.c.bf16 %v325_v30, %v324_v29 }
  0xed   : > { %339 = vst [vmem:[%s208_s29 + $0x8] sm:$0xff] %v450_v31 }
  0xee PF: > { %s13_s14 = sadd.s32 1, %s509_s14   ;;  %s582_s12 = smov %s505_s13 }
  0xef   : > { %p10_p5 = scmp.ge.s32.totalorder %s13_s14, 4   ;;  %s583_s13 = smov %s585_s15 }
  0xf1   :  { %12 = sbr.rel (!%p10_p5) target bundleno = 2 (0x2), region = 62 }

// kernel: _lambda_.4
= control target key start
LH: loop header
LB: loop body
LE: loop exit
PB: predicated region body
PF: predicated region fallthrough
CT: control target
= control target key end

     0   :  { %s531_s12 = smov 0   ;;  %s533_s13 = smov 0   ;;  %s577_s0 = inlined_call_operand.vmem [shape: bf16[2,72,64], index: 0, kind: input, shape index: {}]   ;;  %s578_s1 = inlined_call_operand.vmem [shape: bf16[16,72], index: 1, kind: input, shape index: {}]   ;;  %s579_s2 = inlined_call_operand.vmem [shape: f32[16,1], index: 2, kind: input, shape index: {}]   ;;  %s580_s3 = inlined_call_operand.vmem [shape: bf16[2,16,64], index: 3, kind: output, shape index: {}]  }
   0x1   :  { %s535_s14 = smov 0  }
   0x2 LB: > { %s25_s15 = sadd.s32 1, %s502_s13  ;;  %p411_p0 = scmp.ge.s32.totalorder %s506_s14, 1  ;;  %s506_s14 = sphi %s535_s14, %s13_s14   ;;  %s502_s13 = sphi %s533_s13, %s582_s13   ;;  %s498_s12 = sphi %s531_s12, %s581_s12  }
   0x3   : > { %p27_p1 = scmp.ge.s32.totalorder %s25_s15, 2  ;;  %p156_p2 = scmp.lt.s32.totalorder %s506_s14, 3 }
   0x5   : > { %s584_s15 = smov (%p27_p1, %s25_s15), 0  ;;  %p157_p3 = pnand %p411_p0, %p156_p2 }
   0x6   : > { %p186_p4 = scmp.lt.s32.totalorder (!%p157_p3), %s498_s12, 1 }
   0x7   : > { %160 = sbr.rel (%p157_p3) target bundleno = 242 (0xf2), region = 32 }
   0xc   : > { %v508_v0 = vmov 0.0   ;;  %vm509_vm0 = vmmov 0   ;;  %v214_v1 = vld [vmem:[%s579_s2] sm:$0xff]  ;;  %s586_s12 = smov (!%p186_p4, %s498_s12), 1  ;;  %v510_v2 = vmov 0   ;;  %v215_v3 = vld [vmem:[%s579_s2 + $0x8] sm:$0xff] }
   0xd   : > { %435 = vmatprep.subr.bf16.mxu0 %v508_v0  ;;  %445 = vmatprep.mubr.msk.bf16.mxu0 %vm509_vm0, %v508_v0  ;;  %s449_s18 = smul.u32 36, %s586_s12  ;;  %vm262_vm1 = vcmask 1043456   ;;  %v483_v10 = vld [vmem:[%s578_s1] sm:$0xff]   ;;  %vm258_vm2 = vcmask 588800   ;;  %s426_s26 = sshll.u32 %s586_s12, 3  ;;  %vm321_vm4 = vcmask 519168  }
   0xe   : > { %477 = vset.pattern.permute.xlu0 %v510_v2  ;;  %s201_s29 = scalar_lea.vmem %s580_s3, %s426_s26 }
   0xf   : > { %218 = vperm.xlu0 %477, %v214_v1   ;;  %s193_s23 = scalar_lea.vmem %s577_s0, %s449_s18 }
  0x10   : > { %v478_v4 = vld [vmem:[%s193_s23 + $0x20] ss:$0 sps:$4 sm:$0xff]   ;;  %v479_v6 = vld [vmem:[%s193_s23 + $0x18] sm:$0xff]   ;;  %v480_v7 = vld [vmem:[%s193_s23 + $0x10] sm:$0xff]  }
  0x11   : > { %v264_v5 = vsel %vm262_vm1, %v478_v4, 0  ;;  %v481_v8 = vld [vmem:[%s193_s23 + $0x8] sm:$0xff]   ;;  %v482_v9 = vld [vmem:[%s193_s23] sm:$0xff]  }
  0x12   : > { %436 = vmatpush3.bf16.msra.mxu0 %v264_v5 }
  0x13   : > { %223 = vperm.xlu0 %477, %v215_v3   ;;  %437 = vmatprep.subr.bf16.mxu0 %v508_v0 }
  0x16   : > { %438 = vmatpush3.bf16.msra.mxu0 %v479_v6 }
  0x17   : > { %439 = vmatprep.subr.bf16.mxu0 %v508_v0 }
  0x1a   : > { %440 = vmatpush3.bf16.msra.mxu0 %v480_v7 }
  0x1b   : > { %441 = vmatprep.subr.bf16.mxu0 %v508_v0 }
  0x1e   : > { %442 = vmatpush3.bf16.msra.mxu0 %v481_v8 }
  0x1f   : > { %443 = vmatprep.subr.bf16.mxu0 %v508_v0 }
  0x22   : > { %444 = vmatpush3.bf16.msra.mxu0 %v482_v9 }
  0x25   : > { %446 = vmatmul.mubr.msk.bf16.vlgmr.msra.gmra.mxu0 %vm258_vm2, %v483_v10 }
  0x8a   : > { %v219_v11 = vpop.permute.xlu0 %218 }
  0x8e   : > { %v224_v16 = vpop.permute.xlu0 %223 }
  0xe5   : > { %v300_v12 = vpop.f32.mrf.mxu0 }
  0xe6   : > { %v301_v13 = vadd.f32 %v300_v12, %v219_v11 }
  0xe7   : > { %v447_v14 = vpop.f32.mrf.mxu0 }
  0xe8   : > { %vm307_vm3 = vcmp.ge.f32.partialorder %v301_v13, 0.0  ;;  %v309_v15 = vmul.f32 0.2, %v301_v13 }
  0xe9   : > { %v303_v17 = vpop.f32.mrf.mxu0 }
  0xea   : > { %v311_v18 = vsel %vm307_vm3, %v301_v13, %v309_v15  ;;  %v304_v19 = vadd.f32 %v303_v17, %v224_v16 }
  0xeb   : > { %v427_v20 = vpack.c.bf16 %v311_v18, %v311_v18  ;;  %v448_v21 = vpop.f32.mrf.mxu0 }
  0xec   : > { %vm308_vm5 = vcmp.ge.f32.partialorder %v304_v19, 0.0  ;;  %v310_v22 = vmul.f32 0.2, %v304_v19 }
  0xed   : > { %322 = vst.msk [vmem:[%s201_s29] sm:$0xf] %vm321_vm4, %v427_v20 }
  0xee   : > { %v312_v23 = vsel %vm308_vm5, %v304_v19, %v310_v22 }
  0xef   : > { %v428_v24 = vpack.c.bf16 %v312_v23, %v312_v23 }
  0xf1   : > { %323 = vst.msk [vmem:[%s201_s29 + $0x4] sm:$0xf] %vm321_vm4, %v428_v24 }
  0xf2 PF: > { %s13_s14 = sadd.s32 1, %s506_s14   ;;  %s581_s12 = smov %s502_s13 }
  0xf3   : > { %p10_p5 = scmp.ge.s32.totalorder %s13_s14, 4   ;;  %s582_s13 = smov %s584_s15 }
  0xf5   :  { %12 = sbr.rel (!%p10_p5) target bundleno = 2 (0x2), region = 62 }

// kernel: _lambda_.5
= control target key start
LH: loop header
LB: loop body
LE: loop exit
PB: predicated region body
PF: predicated region fallthrough
CT: control target
= control target key end

     0   :  { %s633_s12 = smov 0   ;;  %s635_s13 = smov 0   ;;  %s709_s0 = inlined_call_operand.vmem [shape: bf16[2,144,16], index: 0, kind: input, shape index: {}]   ;;  %s710_s1 = inlined_call_operand.vmem [shape: bf16[32,144], index: 1, kind: input, shape index: {}]   ;;  %s711_s2 = inlined_call_operand.vmem [shape: f32[32,1], index: 2, kind: input, shape index: {}]   ;;  %s712_s3 = inlined_call_operand.vmem [shape: bf16[2,32,16], index: 3, kind: output, shape index: {}]  }
   0x1   :  { %s637_s14 = smov 0  }
   0x2 LB: > { %s25_s15 = sadd.s32 1, %s606_s13  ;;  %p497_p0 = scmp.ge.s32.totalorder %s610_s14, 1  ;;  %s610_s14 = sphi %s637_s14, %s13_s14   ;;  %s606_s13 = sphi %s635_s13, %s714_s13   ;;  %s602_s12 = sphi %s633_s12, %s713_s12  }
   0x3   : > { %p27_p1 = scmp.ge.s32.totalorder %s25_s15, 2  ;;  %p156_p2 = scmp.lt.s32.totalorder %s610_s14, 3 }
   0x5   : > { %s716_s15 = smov (%p27_p1, %s25_s15), 0  ;;  %p157_p3 = pnand %p497_p0, %p156_p2 }
   0x6   : > { %p186_p4 = scmp.lt.s32.totalorder (!%p157_p3), %s602_s12, 1 }
   0x7   : > { %160 = sbr.rel (%p157_p3) target bundleno = 257 (0x101), region = 32 }
   0xc   : > { %v612_v0 = vmov 0   ;;  %v584_v1 = vld [vmem:[%s710_s1 + $0x4] ss:$8 sps:$4 sm:$0xff]   ;;  %vm321_vm0 = vcmask 130048   ;;  %s718_s12 = smov (!%p186_p4, %s602_s12), 1  ;;  %v227_v3 = vld [vmem:[%s711_s2 + $0x10] sm:$0xff] }
   0xd   : > { %328 = vmatprep.subr.bf16.mxu0 %v612_v0  ;;  %527 = vmatprep.subr.bf16.mxu1 %v612_v0  ;;  %v587_v2 = vld [vmem:[%s710_s1 + $0x14] ss:$8 sps:$4 sm:$0xff]   ;;  %v225_v4 = vld [vmem:[%s711_s2] sm:$0xff]  ;;  %s545_s24 = smul.u32 72, %s718_s12  ;;  %v226_v6 = vld [vmem:[%s711_s2 + $0x8] sm:$0xff]  ;;  %s522_s9 = sshll.u32 %s718_s12, 4 }
   0xe   : > { %572 = vset.pattern.permute.xlu1 %v612_v0  ;;  %571 = vset.pattern.permute.xlu0 %v612_v0  ;;  %v228_v5 = vld [vmem:[%s711_s2 + $0x18] sm:$0xff]  ;;  %v582_v16 = vld [vmem:[%s710_s1] ss:$8 sps:$4 sm:$0xff]   ;;  %vm405_vm3 = vcmask 125952   ;;  %s201_s16 = scalar_lea.vmem %s712_s3, %s522_s9 }
   0xf   : > { %514 = vmatprep.mubr.msk.bf16.mxu0 %vm321_vm0, %v584_v1  ;;  %241 = vperm.xlu1 %572, %v227_v3   ;;  %s675_s4 = scalar_lea.vmem %s709_s0, %s545_s24  ;;  %v585_v17 = vld [vmem:[%s710_s1 + $0x10] ss:$8 sps:$4 sm:$0xff]  }
  0x10   : > { %515 = vmatprep.mubr.msk.bf16.mxu1 %vm321_vm0, %v587_v2  ;;  %231 = vperm.xlu0 %571, %v225_v4   ;;  %v573_v7 = vld [vmem:[%s675_s4 + $0x38] sm:$0xff]   ;;  %v574_v8 = vld [vmem:[%s675_s4 + $0x30] sm:$0xff]   ;;  %v575_v9 = vld [vmem:[%s675_s4 + $0x28] sm:$0xff]  }
  0x11   : > { %329 = vmatpush1.bf16.msra.mxu0 %v573_v7  ;;  %536 = vmatpush1.bf16.msra.mxu1 %v573_v7  ;;  %v576_v10 = vld [vmem:[%s675_s4 + $0x20] sm:$0xff]   ;;  %v577_v11 = vld [vmem:[%s675_s4 + $0x18] sm:$0xff]   ;;  %v578_v12 = vld [vmem:[%s675_s4 + $0x10] sm:$0xff]  }
  0x12   : > { %330 = vmatprep.subr.bf16.mxu0 %v612_v0  ;;  %528 = vmatprep.subr.bf16.mxu1 %v612_v0  ;;  %v579_v13 = vld [vmem:[%s675_s4 + $0x8] sm:$0xff]   ;;  %v580_v14 = vld [vmem:[%s675_s4] sm:$0xff]  }
  0x13   : > { %246 = vperm.xlu1 %572, %v228_v5   ;;  %v581_v15 = vld [vmem:[%s675_s4 + $0x40] sm:$0xff]  }
  0x14   : > { %236 = vperm.xlu0 %571, %v226_v6  }
  0x15   : > { %331 = vmatpush1.bf16.msra.mxu0 %v574_v8  ;;  %537 = vmatpush1.bf16.msra.mxu1 %v574_v8 }
  0x16   : > { %332 = vmatprep.subr.bf16.mxu0 %v612_v0  ;;  %529 = vmatprep.subr.bf16.mxu1 %v612_v0 }
  0x19   : > { %333 = vmatpush1.bf16.msra.mxu0 %v575_v9  ;;  %538 = vmatpush1.bf16.msra.mxu1 %v575_v9 }
  0x1a   : > { %334 = vmatprep.subr.bf16.mxu0 %v612_v0  ;;  %530 = vmatprep.subr.bf16.mxu1 %v612_v0 }
  0x1d   : > { %335 = vmatpush1.bf16.msra.mxu0 %v576_v10  ;;  %539 = vmatpush1.bf16.msra.mxu1 %v576_v10 }
  0x1e   : > { %336 = vmatprep.subr.bf16.mxu0 %v612_v0  ;;  %531 = vmatprep.subr.bf16.mxu1 %v612_v0 }
  0x21   : > { %337 = vmatpush1.bf16.msra.mxu0 %v577_v11  ;;  %540 = vmatpush1.bf16.msra.mxu1 %v577_v11 }
  0x22   : > { %338 = vmatprep.subr.bf16.mxu0 %v612_v0  ;;  %532 = vmatprep.subr.bf16.mxu1 %v612_v0 }
  0x25   : > { %339 = vmatpush1.bf16.msra.mxu0 %v578_v12  ;;  %541 = vmatpush1.bf16.msra.mxu1 %v578_v12 }
  0x26   : > { %340 = vmatprep.subr.bf16.mxu0 %v612_v0  ;;  %533 = vmatprep.subr.bf16.mxu1 %v612_v0 }
  0x29   : > { %341 = vmatpush1.bf16.msra.mxu0 %v579_v13  ;;  %542 = vmatpush1.bf16.msra.mxu1 %v579_v13 }
  0x2a   : > { %342 = vmatprep.subr.bf16.mxu0 %v612_v0  ;;  %534 = vmatprep.subr.bf16.mxu1 %v612_v0 }
  0x2d   : > { %343 = vmatpush1.bf16.msra.mxu0 %v580_v14  ;;  %543 = vmatpush1.bf16.msra.mxu1 %v580_v14 }
  0x2e   : > { %358 = vmatprep.subr.bf16.mxu0 %v612_v0  ;;  %535 = vmatprep.subr.bf16.mxu1 %v612_v0 }
  0x31   : > { %359 = vmatpush2.bf16.msra.mxu0 %v581_v15  ;;  %544 = vmatpush2.bf16.msra.mxu1 %v581_v15 }
  0x34   : > { %361 = vmatmul.mubr.bf16.vlgmr.msra.gmra.mxu0 %v582_v16  ;;  %369 = vmatmul.mubr.bf16.vlgmr.msra.gmra.mxu1 %v585_v17 }
  0x8a   : > { %v242_v18 = vpop.permute.xlu1 %241 }
  0x8b   : > { %v232_v19 = vpop.permute.xlu0 %231 }
  0x8e   : > { %v247_v26 = vpop.permute.xlu1 %246 }
  0x8f   : > { %v237_v27 = vpop.permute.xlu0 %236 }
  0xf4   : > { %v362_v20 = vpop.f32.mrf.mxu0  ;;  %v370_v21 = vpop.f32.mrf.mxu1 }
  0xf5   : > { %v363_v22 = vadd.f32 %v362_v20, %v232_v19  ;;  %v371_v23 = vadd.f32 %v370_v21, %v242_v18 }
  0xf6   : > { %v364_v24 = vpop.f32.mrf.mxu0  ;;  %v372_v25 = vpop.f32.mrf.mxu1 }
  0xf7   : > { %vm377_vm1 = vcmp.ge.f32.partialorder %v363_v22, 0.0  ;;  %v381_v28 = vmul.f32 0.2, %v363_v22  ;;  %vm379_vm2 = vcmp.ge.f32.partialorder %v371_v23, 0.0  ;;  %v383_v29 = vmul.f32 0.2, %v371_v23 }
  0xf8   : > { %v365_v30 = vpop.f32.mrf.mxu0  ;;  %v373_v31 = vpop.f32.mrf.mxu1 }
  0xf9   : > { %v385_v32 = vsel %vm377_vm1, %v363_v22, %v381_v28  ;;  %v387_v33 = vsel %vm379_vm2, %v371_v23, %v383_v29  ;;  %v366_v34 = vadd.f32 %v365_v30, %v237_v27  ;;  %v374_v35 = vadd.f32 %v373_v31, %v247_v26 }
  0xfa   : > { %v523_v36 = vpack.c.bf16 %v385_v32, %v385_v32  ;;  %v525_v37 = vpack.c.bf16 %v387_v33, %v387_v33  ;;  %v367_v38 = vpop.f32.mrf.mxu0  ;;  %v375_v39 = vpop.f32.mrf.mxu1 }
  0xfb   : > { %vm378_vm4 = vcmp.ge.f32.partialorder %v366_v34, 0.0  ;;  %v382_v40 = vmul.f32 0.2, %v366_v34  ;;  %vm380_vm5 = vcmp.ge.f32.partialorder %v374_v35, 0.0  ;;  %v384_v41 = vmul.f32 0.2, %v374_v35 }
  0xfc   : > { %406 = vst.msk [vmem:[%s201_s16] sm:$0xf] %vm405_vm3, %v523_v36  ;;  %408 = vst.msk [vmem:[%s201_s16 + $0x8] sm:$0xf] %vm405_vm3, %v525_v37 }
  0xfd   : > { %v386_v42 = vsel %vm378_vm4, %v366_v34, %v382_v40  ;;  %v388_v43 = vsel %vm380_vm5, %v374_v35, %v384_v41 }
  0xfe   : > { %v524_v44 = vpack.c.bf16 %v386_v42, %v386_v42  ;;  %v526_v45 = vpack.c.bf16 %v388_v43, %v388_v43 }
 0x100   : > { %407 = vst.msk [vmem:[%s201_s16 + $0x4] sm:$0xf] %vm405_vm3, %v524_v44  ;;  %409 = vst.msk [vmem:[%s201_s16 + $0xc] sm:$0xf] %vm405_vm3, %v526_v45 }
 0x101 PF: > { %s13_s14 = sadd.s32 1, %s610_s14   ;;  %s713_s12 = smov %s606_s13 }
 0x102   : > { %p10_p5 = scmp.ge.s32.totalorder %s13_s14, 4   ;;  %s714_s13 = smov %s716_s15 }
 0x104   :  { %12 = sbr.rel (!%p10_p5) target bundleno = 2 (0x2), region = 62 }

</bundles_post_ra>
